<compile_context>
chip_gen: v6e
topology: v6e:2x2x1
jax: 0.10.0
libtpu: 0.0.40
codegen_flags: <defaults>
</compile_context>

<pallas_src>
import jax
import jax.numpy as jnp
from jax.experimental import pallas as pl
from jax.experimental.pallas import tpu as pltpu

INPUT_DIM = 8
OUTPUT_DIM = 4
HIDDEN_DIM = 128
NUM_LAYERS = 5
BATCH = 16

PAD_OUT = 128     # lane-dense padded output width (sliced back to 4 in wrapper)


def _mlp_kernel(x_ref,
                w0_ref, b0_ref, w1_ref, b1_ref, w2_ref, b2_ref,
                w3_ref, b3_ref, w4_ref, b4_ref, wo_ref, bo_ref,
                out_ref):
    """One (tile_b, ...) batch tile through 5x(Linear+ReLU) + output Linear."""
    # First layer: (tile_b, 8) @ (8, 128) bf16 -> f32 accumulation. K=8, no padding.
    h = jnp.dot(x_ref[...], w0_ref[...], preferred_element_type=jnp.float32)
    # bf16 elementwise path (bias add + ReLU); also the cast for the next matmul.
    h = jnp.maximum(h.astype(jnp.bfloat16) + b0_ref[...], 0)

    for w_ref, b_ref in ((w1_ref, b1_ref), (w2_ref, b2_ref),
                         (w3_ref, b3_ref), (w4_ref, b4_ref)):
        h = jnp.dot(h, w_ref[...], preferred_element_type=jnp.float32)
        h = jnp.maximum(h.astype(jnp.bfloat16) + b_ref[...], 0)
        # F.dropout(training=False) == identity

    y = jnp.dot(h, wo_ref[...], preferred_element_type=jnp.float32)
    out_ref[...] = (y + bo_ref[...]).astype(out_ref.dtype)   # lane-dense f32 store


def prepare_params(params):
    """One-time param prep: reshape biases, pad output layer, cast to bf16.

    Hidden weights stay at their logical shapes ((8,128), (128,128)); only the
    output layer is lane-padded 4 -> 128. Hidden biases are bf16 (bf16 VALU on
    v6e/v7x); output bias stays f32 for the f32 output add.
    """
    flat = []
    w0, b0 = params[0]
    flat += [w0.astype(jnp.bfloat16), b0.reshape(1, -1).astype(jnp.bfloat16)]
    for (w, b) in params[1:NUM_LAYERS]:
        flat += [w.astype(jnp.bfloat16), b.reshape(1, -1).astype(jnp.bfloat16)]
    wo, bo = params[-1]
    wo_p = jnp.zeros((HIDDEN_DIM, PAD_OUT), jnp.float32).at[:, :OUTPUT_DIM].set(wo)
    bo_p = jnp.zeros((1, PAD_OUT), jnp.float32).at[:, :OUTPUT_DIM].set(bo.reshape(1, -1))
    flat += [wo_p.astype(jnp.bfloat16), bo_p]
    return tuple(flat)


def _choose_tile_b(batch):
    """Batch rows per grid step: multiple of 8, >=2 grid steps when possible,
    capped at 512 so large (e.g. MC-sample-folded) batches amortize per-step
    overhead while the working set stays tiny even on v7x's 64 MiB VMEM."""
    b8 = ((batch + 7) // 8) * 8
    if b8 >= 1024:
        return 512
    if b8 >= 16:
        return min(((b8 // 2 + 7) // 8) * 8, 512)   # split so v7x's 2nd TC gets work
    return 8


def bayesian_net_forward(x, flat_params):
    """x: (B, INPUT_DIM) f32. flat_params: output of prepare_params."""
    B, in_dim = x.shape
    assert in_dim == INPUT_DIM and len(flat_params) == 2 * (NUM_LAYERS + 1)

    tile_b = _choose_tile_b(B)
    grid_n = pl.cdiv(B, tile_b)
    b_pad = grid_n * tile_b

    # Pad batch to a tile multiple; keep only the 8 real feature lanes; bf16 DMA.
    x_p = jnp.zeros((b_pad, INPUT_DIM), jnp.float32).at[:B, :].set(x).astype(jnp.bfloat16)

    # Activations stream per batch tile; weights/biases are full blocks with a
    # constant index_map, so they stay resident in VMEM across grid steps.
    in_specs = [pl.BlockSpec((tile_b, INPUT_DIM), lambda i: (i, 0))]
    for arr in flat_params:
        in_specs.append(pl.BlockSpec(arr.shape, lambda i: (0, 0)))

    flops = 2 * b_pad * (INPUT_DIM * HIDDEN_DIM
                         + (NUM_LAYERS - 1) * HIDDEN_DIM * HIDDEN_DIM
                         + HIDDEN_DIM * PAD_OUT)
    bytes_accessed = (x_p.size * x_p.dtype.itemsize
                      + sum(a.size * a.dtype.itemsize for a in flat_params)
                      + b_pad * PAD_OUT * 4)

    out_p = pl.pallas_call(
        _mlp_kernel,
        out_shape=jax.ShapeDtypeStruct((b_pad, PAD_OUT), jnp.float32),
        grid=(grid_n,),
        in_specs=in_specs,
        out_specs=pl.BlockSpec((tile_b, PAD_OUT), lambda i: (i, 0)),
        compiler_params=pltpu.CompilerParams(
            dimension_semantics=("parallel",)),
        cost_estimate=pl.CostEstimate(flops=flops, transcendentals=0,
                                      bytes_accessed=bytes_accessed),
    )(x_p, *flat_params)

    return out_p[:B, :OUTPUT_DIM]


def init_params(key):
    """nn.Linear-style init: uniform(+-1/sqrt(fan_in)); W stored as (in, out)."""
    params = []
    dims = [(INPUT_DIM, HIDDEN_DIM)] + [(HIDDEN_DIM, HIDDEN_DIM)] * (NUM_LAYERS - 1) \
           + [(HIDDEN_DIM, OUTPUT_DIM)]
    for (fan_in, fan_out) in dims:
        key, kw, kb = jax.random.split(key, 3)
        bound = 1.0 / jnp.sqrt(fan_in)
        w = jax.random.uniform(kw, (fan_in, fan_out), jnp.float32, -bound, bound)
        b = jax.random.uniform(kb, (1, fan_out), jnp.float32, -bound, bound)
        params.append((w, b))
    return params


def reference_forward(x, params):
    """Pure-JAX f32 reference (eval-mode PyTorch forward)."""
    h = x
    for (w, b) in params[:-1]:
        h = jnp.maximum(h @ w + b, 0.0)
    w, b = params[-1]
    return h @ w + b


if __name__ == "__main__":
    key = jax.random.PRNGKey(0)
    kx, kp = jax.random.split(key)
    x = jax.random.normal(kx, (BATCH, INPUT_DIM), jnp.float32)
    params = init_params(kp)

    # One-time param prep (padding + bf16 cast hoisted out of the call path).
    flat_params = jax.tree_util.tree_map(jax.block_until_ready, prepare_params(params))

    fwd = jax.jit(bayesian_net_forward)
    out = fwd(x, flat_params)
    out = jax.block_until_ready(out)

    ref = reference_forward(x, params)
    assert out.shape == (BATCH, OUTPUT_DIM)
    # bf16 matmul operands / bf16 inter-layer activations (f32 accumulation)
    # -> expect ~1e-3..1e-2 deviation from the pure-f32 reference.
    assert jnp.allclose(out, ref, atol=2e-2, rtol=2e-2), (
        f"mismatch: max abs err {jnp.max(jnp.abs(out - ref))}")

    print("KERNEL_OK")
</pallas_src>

<mosaic_0001>
module attributes {stable_mosaic.version = 11 : i64} {
  func.func @_mlp_kernel(%arg0: i32, %arg1: memref<8x8xbf16, #tpu.memory_space<vmem>>, %arg2: memref<8x128xbf16, #tpu.memory_space<vmem>>, %arg3: memref<1x128xbf16, #tpu.memory_space<vmem>>, %arg4: memref<128x128xbf16, #tpu.memory_space<vmem>>, %arg5: memref<1x128xbf16, #tpu.memory_space<vmem>>, %arg6: memref<128x128xbf16, #tpu.memory_space<vmem>>, %arg7: memref<1x128xbf16, #tpu.memory_space<vmem>>, %arg8: memref<128x128xbf16, #tpu.memory_space<vmem>>, %arg9: memref<1x128xbf16, #tpu.memory_space<vmem>>, %arg10: memref<128x128xbf16, #tpu.memory_space<vmem>>, %arg11: memref<1x128xbf16, #tpu.memory_space<vmem>>, %arg12: memref<128x128xbf16, #tpu.memory_space<vmem>>, %arg13: memref<1x128xf32, #tpu.memory_space<vmem>>, %arg14: memref<8x128xf32, #tpu.memory_space<vmem>>) attributes {dimension_semantics = [#tpu.dimension_semantics<parallel>], iteration_bounds = array<i64: 2>, scalar_prefetch = 0 : i64, scratch_operands = 0 : i64, tpu.core_type = #tpu.core_type<tc>, window_params = [{transform_indices = @transform_0, window_bounds = array<i64: 8, 8>}, {pipeline_mode = #tpu.pipeline_mode<synchronous>, transform_indices = @transform_1, window_bounds = array<i64: 8, 128>}, {pipeline_mode = #tpu.pipeline_mode<synchronous>, transform_indices = @transform_2, window_bounds = array<i64: 1, 128>}, {pipeline_mode = #tpu.pipeline_mode<synchronous>, transform_indices = @transform_3, window_bounds = array<i64: 128, 128>}, {pipeline_mode = #tpu.pipeline_mode<synchronous>, transform_indices = @transform_4, window_bounds = array<i64: 1, 128>}, {pipeline_mode = #tpu.pipeline_mode<synchronous>, transform_indices = @transform_5, window_bounds = array<i64: 128, 128>}, {pipeline_mode = #tpu.pipeline_mode<synchronous>, transform_indices = @transform_6, window_bounds = array<i64: 1, 128>}, {pipeline_mode = #tpu.pipeline_mode<synchronous>, transform_indices = @transform_7, window_bounds = array<i64: 128, 128>}, {pipeline_mode = #tpu.pipeline_mode<synchronous>, transform_indices = @transform_8, window_bounds = array<i64: 1, 128>}, {pipeline_mode = #tpu.pipeline_mode<synchronous>, transform_indices = @transform_9, window_bounds = array<i64: 128, 128>}, {pipeline_mode = #tpu.pipeline_mode<synchronous>, transform_indices = @transform_10, window_bounds = array<i64: 1, 128>}, {pipeline_mode = #tpu.pipeline_mode<synchronous>, transform_indices = @transform_11, window_bounds = array<i64: 128, 128>}, {pipeline_mode = #tpu.pipeline_mode<synchronous>, transform_indices = @transform_12, window_bounds = array<i64: 1, 128>}, {transform_indices = @transform_13, window_bounds = array<i64: 8, 128>}]} {
    %c0 = arith.constant 0 : index
    %c0_0 = arith.constant 0 : index
    %0 = vector.load %arg1[%c0, %c0_0] : memref<8x8xbf16, #tpu.memory_space<vmem>>, vector<8x8xbf16>
    %c0_1 = arith.constant 0 : index
    %c0_2 = arith.constant 0 : index
    %1 = vector.load %arg2[%c0_1, %c0_2] : memref<8x128xbf16, #tpu.memory_space<vmem>>, vector<8x128xbf16>
    %cst = arith.constant dense<0.000000e+00> : vector<8x128xf32>
    %2 = tpu.matmul %0, %1, %cst {dimension_numbers = #tpu.dot_dimension_numbers<[1], [0], [0], [1], [0, 0, 1, 1], [], []>} : vector<8x8xbf16>, vector<8x128xbf16>, vector<8x128xf32> -> vector<8x128xf32>
    %3 = arith.truncf %2 : vector<8x128xf32> to vector<8x128xbf16>
    %c0_3 = arith.constant 0 : index
    %c0_4 = arith.constant 0 : index
    %4 = vector.load %arg3[%c0_3, %c0_4] : memref<1x128xbf16, #tpu.memory_space<vmem>>, vector<1x128xbf16>
    %5 = vector.broadcast %4 : vector<1x128xbf16> to vector<8x128xbf16>
    %6 = arith.addf %3, %5 : vector<8x128xbf16>
    %cst_5 = arith.constant 0.000000e+00 : bf16
    %7 = vector.broadcast %cst_5 : bf16 to vector<8x128xbf16>
    %8 = arith.maximumf %6, %7 : vector<8x128xbf16>
    %c0_6 = arith.constant 0 : index
    %c0_7 = arith.constant 0 : index
    %9 = vector.load %arg4[%c0_6, %c0_7] : memref<128x128xbf16, #tpu.memory_space<vmem>>, vector<128x128xbf16>
    %cst_8 = arith.constant dense<0.000000e+00> : vector<8x128xf32>
    %10 = tpu.matmul %8, %9, %cst_8 {dimension_numbers = #tpu.dot_dimension_numbers<[1], [0], [0], [1], [0, 0, 1, 1], [], []>} : vector<8x128xbf16>, vector<128x128xbf16>, vector<8x128xf32> -> vector<8x128xf32>
    %11 = arith.truncf %10 : vector<8x128xf32> to vector<8x128xbf16>
    %c0_9 = arith.constant 0 : index
    %c0_10 = arith.constant 0 : index
    %12 = vector.load %arg5[%c0_9, %c0_10] : memref<1x128xbf16, #tpu.memory_space<vmem>>, vector<1x128xbf16>
    %13 = vector.broadcast %12 : vector<1x128xbf16> to vector<8x128xbf16>
    %14 = arith.addf %11, %13 : vector<8x128xbf16>
    %cst_11 = arith.constant 0.000000e+00 : bf16
    %15 = vector.broadcast %cst_11 : bf16 to vector<8x128xbf16>
    %16 = arith.maximumf %14, %15 : vector<8x128xbf16>
    %c0_12 = arith.constant 0 : index
    %c0_13 = arith.constant 0 : index
    %17 = vector.load %arg6[%c0_12, %c0_13] : memref<128x128xbf16, #tpu.memory_space<vmem>>, vector<128x128xbf16>
    %cst_14 = arith.constant dense<0.000000e+00> : vector<8x128xf32>
    %18 = tpu.matmul %16, %17, %cst_14 {dimension_numbers = #tpu.dot_dimension_numbers<[1], [0], [0], [1], [0, 0, 1, 1], [], []>} : vector<8x128xbf16>, vector<128x128xbf16>, vector<8x128xf32> -> vector<8x128xf32>
    %19 = arith.truncf %18 : vector<8x128xf32> to vector<8x128xbf16>
    %c0_15 = arith.constant 0 : index
    %c0_16 = arith.constant 0 : index
    %20 = vector.load %arg7[%c0_15, %c0_16] : memref<1x128xbf16, #tpu.memory_space<vmem>>, vector<1x128xbf16>
    %21 = vector.broadcast %20 : vector<1x128xbf16> to vector<8x128xbf16>
    %22 = arith.addf %19, %21 : vector<8x128xbf16>
    %cst_17 = arith.constant 0.000000e+00 : bf16
    %23 = vector.broadcast %cst_17 : bf16 to vector<8x128xbf16>
    %24 = arith.maximumf %22, %23 : vector<8x128xbf16>
    %c0_18 = arith.constant 0 : index
    %c0_19 = arith.constant 0 : index
    %25 = vector.load %arg8[%c0_18, %c0_19] : memref<128x128xbf16, #tpu.memory_space<vmem>>, vector<128x128xbf16>
    %cst_20 = arith.constant dense<0.000000e+00> : vector<8x128xf32>
    %26 = tpu.matmul %24, %25, %cst_20 {dimension_numbers = #tpu.dot_dimension_numbers<[1], [0], [0], [1], [0, 0, 1, 1], [], []>} : vector<8x128xbf16>, vector<128x128xbf16>, vector<8x128xf32> -> vector<8x128xf32>
    %27 = arith.truncf %26 : vector<8x128xf32> to vector<8x128xbf16>
    %c0_21 = arith.constant 0 : index
    %c0_22 = arith.constant 0 : index
    %28 = vector.load %arg9[%c0_21, %c0_22] : memref<1x128xbf16, #tpu.memory_space<vmem>>, vector<1x128xbf16>
    %29 = vector.broadcast %28 : vector<1x128xbf16> to vector<8x128xbf16>
    %30 = arith.addf %27, %29 : vector<8x128xbf16>
    %cst_23 = arith.constant 0.000000e+00 : bf16
    %31 = vector.broadcast %cst_23 : bf16 to vector<8x128xbf16>
    %32 = arith.maximumf %30, %31 : vector<8x128xbf16>
    %c0_24 = arith.constant 0 : index
    %c0_25 = arith.constant 0 : index
    %33 = vector.load %arg10[%c0_24, %c0_25] : memref<128x128xbf16, #tpu.memory_space<vmem>>, vector<128x128xbf16>
    %cst_26 = arith.constant dense<0.000000e+00> : vector<8x128xf32>
    %34 = tpu.matmul %32, %33, %cst_26 {dimension_numbers = #tpu.dot_dimension_numbers<[1], [0], [0], [1], [0, 0, 1, 1], [], []>} : vector<8x128xbf16>, vector<128x128xbf16>, vector<8x128xf32> -> vector<8x128xf32>
    %35 = arith.truncf %34 : vector<8x128xf32> to vector<8x128xbf16>
    %c0_27 = arith.constant 0 : index
    %c0_28 = arith.constant 0 : index
    %36 = vector.load %arg11[%c0_27, %c0_28] : memref<1x128xbf16, #tpu.memory_space<vmem>>, vector<1x128xbf16>
    %37 = vector.broadcast %36 : vector<1x128xbf16> to vector<8x128xbf16>
    %38 = arith.addf %35, %37 : vector<8x128xbf16>
    %cst_29 = arith.constant 0.000000e+00 : bf16
    %39 = vector.broadcast %cst_29 : bf16 to vector<8x128xbf16>
    %40 = arith.maximumf %38, %39 : vector<8x128xbf16>
    %c0_30 = arith.constant 0 : index
    %c0_31 = arith.constant 0 : index
    %41 = vector.load %arg12[%c0_30, %c0_31] : memref<128x128xbf16, #tpu.memory_space<vmem>>, vector<128x128xbf16>
    %cst_32 = arith.constant dense<0.000000e+00> : vector<8x128xf32>
    %42 = tpu.matmul %40, %41, %cst_32 {dimension_numbers = #tpu.dot_dimension_numbers<[1], [0], [0], [1], [0, 0, 1, 1], [], []>} : vector<8x128xbf16>, vector<128x128xbf16>, vector<8x128xf32> -> vector<8x128xf32>
    %c0_33 = arith.constant 0 : index
    %c0_34 = arith.constant 0 : index
    %43 = vector.load %arg13[%c0_33, %c0_34] : memref<1x128xf32, #tpu.memory_space<vmem>>, vector<1x128xf32>
    %44 = vector.broadcast %43 : vector<1x128xf32> to vector<8x128xf32>
    %45 = arith.addf %42, %44 : vector<8x128xf32>
    %c0_35 = arith.constant 0 : index
    %c0_36 = arith.constant 0 : index
    %46 = vector.load %arg14[%c0_35, %c0_36] : memref<8x128xf32, #tpu.memory_space<vmem>>, vector<8x128xf32>
    tpu.vector_store %arg14[%c0_35, %c0_36], %45 {strides = array<i32>} : memref<8x128xf32, #tpu.memory_space<vmem>>, vector<8x128xf32>,
    return
  }
  func.func @transform_0(%arg0: i32) -> (i32, i32) {
    %c0_i32 = arith.constant 0 : i32
    %c0_i32_0 = arith.constant 0 : i32
    return %arg0, %c0_i32 : i32, i32
  }
  func.func @transform_1(%arg0: i32) -> (i32, i32) {
    %c0_i32 = arith.constant 0 : i32
    %c0_i32_0 = arith.constant 0 : i32
    %c0_i32_1 = arith.constant 0 : i32
    return %c0_i32, %c0_i32_0 : i32, i32
  }
  func.func @transform_2(%arg0: i32) -> (i32, i32) {
    %c0_i32 = arith.constant 0 : i32
    %c0_i32_0 = arith.constant 0 : i32
    %c0_i32_1 = arith.constant 0 : i32
    return %c0_i32, %c0_i32_0 : i32, i32
  }
  func.func @transform_3(%arg0: i32) -> (i32, i32) {
    %c0_i32 = arith.constant 0 : i32
    %c0_i32_0 = arith.constant 0 : i32
    %c0_i32_1 = arith.constant 0 : i32
    return %c0_i32, %c0_i32_0 : i32, i32
  }
  func.func @transform_4(%arg0: i32) -> (i32, i32) {
    %c0_i32 = arith.constant 0 : i32
    %c0_i32_0 = arith.constant 0 : i32
    %c0_i32_1 = arith.constant 0 : i32
    return %c0_i32, %c0_i32_0 : i32, i32
  }
  func.func @transform_5(%arg0: i32) -> (i32, i32) {
    %c0_i32 = arith.constant 0 : i32
    %c0_i32_0 = arith.constant 0 : i32
    %c0_i32_1 = arith.constant 0 : i32
    return %c0_i32, %c0_i32_0 : i32, i32
  }
  func.func @transform_6(%arg0: i32) -> (i32, i32) {
    %c0_i32 = arith.constant 0 : i32
    %c0_i32_0 = arith.constant 0 : i32
    %c0_i32_1 = arith.constant 0 : i32
    return %c0_i32, %c0_i32_0 : i32, i32
  }
  func.func @transform_7(%arg0: i32) -> (i32, i32) {
    %c0_i32 = arith.constant 0 : i32
    %c0_i32_0 = arith.constant 0 : i32
    %c0_i32_1 = arith.constant 0 : i32
    return %c0_i32, %c0_i32_0 : i32, i32
  }
  func.func @transform_8(%arg0: i32) -> (i32, i32) {
    %c0_i32 = arith.constant 0 : i32
    %c0_i32_0 = arith.constant 0 : i32
    %c0_i32_1 = arith.constant 0 : i32
    return %c0_i32, %c0_i32_0 : i32, i32
  }
  func.func @transform_9(%arg0: i32) -> (i32, i32) {
    %c0_i32 = arith.constant 0 : i32
    %c0_i32_0 = arith.constant 0 : i32
    %c0_i32_1 = arith.constant 0 : i32
    return %c0_i32, %c0_i32_0 : i32, i32
  }
  func.func @transform_10(%arg0: i32) -> (i32, i32) {
    %c0_i32 = arith.constant 0 : i32
    %c0_i32_0 = arith.constant 0 : i32
    %c0_i32_1 = arith.constant 0 : i32
    return %c0_i32, %c0_i32_0 : i32, i32
  }
  func.func @transform_11(%arg0: i32) -> (i32, i32) {
    %c0_i32 = arith.constant 0 : i32
    %c0_i32_0 = arith.constant 0 : i32
    %c0_i32_1 = arith.constant 0 : i32
    return %c0_i32, %c0_i32_0 : i32, i32
  }
  func.func @transform_12(%arg0: i32) -> (i32, i32) {
    %c0_i32 = arith.constant 0 : i32
    %c0_i32_0 = arith.constant 0 : i32
    %c0_i32_1 = arith.constant 0 : i32
    return %c0_i32, %c0_i32_0 : i32, i32
  }
  func.func @transform_13(%arg0: i32) -> (i32, i32) {
    %c0_i32 = arith.constant 0 : i32
    %c0_i32_0 = arith.constant 0 : i32
    return %arg0, %c0_i32 : i32, i32
  }
}

</mosaic_0001>

<bundles_post_ra>
// kernel: bayesian_net_forward.1
= control target key start
LH: loop header
LB: loop body
LE: loop exit
PB: predicated region body
PF: predicated region fallthrough
CT: control target
= control target key end

     0   :  { %18 = vsyncpa [#allocation3], 0  ;;  %s2005_s0 = inlined_call_operand.vmem [shape: bf16[16,8], index: 0, kind: input, shape index: {}]   ;;  %s2006_s1 = inlined_call_operand.vmem [shape: bf16[8,128], index: 1, kind: input, shape index: {}]   ;;  %s2007_s2 = inlined_call_operand.vmem [shape: bf16[1,128], index: 2, kind: input, shape index: {}]   ;;  %s2008_s3 = inlined_call_operand.hbm [shape: bf16[128,128], index: 3, kind: input, shape index: {}]   ;;  %s2009_s4 = inlined_call_operand.vmem [shape: bf16[1,128], index: 4, kind: input, shape index: {}]   ;;  %s2010_s5 = inlined_call_operand.hbm [shape: bf16[128,128], index: 5, kind: input, shape index: {}]   ;;  %s2011_s6 = inlined_call_operand.vmem [shape: bf16[1,128], index: 6, kind: input, shape index: {}]   ;;  %s2012_s7 = inlined_call_operand.hbm [shape: bf16[128,128], index: 7, kind: input, shape index: {}]   ;;  %s2013_s8 = inlined_call_operand.vmem [shape: bf16[1,128], index: 8, kind: input, shape index: {}]   ;;  %s2014_s9 = inlined_call_operand.hbm [shape: bf16[128,128], index: 9, kind: input, shape index: {}]   ;;  %s2015_s10 = inlined_call_operand.vmem [shape: bf16[1,128], index: 10, kind: input, shape index: {}]   ;;  %s2016_s11 = inlined_call_operand.hbm [shape: bf16[128,128], index: 11, kind: input, shape index: {}]   ;;  %s2017_s12 = inlined_call_operand.vmem [shape: f32[1,128], index: 12, kind: input, shape index: {}]   ;;  %s2018_s13 = inlined_call_operand.vmem [shape: f32[16,128], index: 13, kind: output, shape index: {}]  }
   0x1   :  { %19 = vsyncpa [#allocation5], 0 }
   0x2   :  { %20 = vsyncpa [#allocation8], 0  ;;  %s1794_s25 = smov 0  }
   0x3 LB: > { %s1800_s26 = sadd.s32 4294967295, %s1712_s25   ;;  %p1248_p0 = scmp.ge.s32.totalorder %s1712_s25, 1  ;;  %s1712_s25 = sphi %s1794_s25, %s26_s25  }
   0x4   : > { %p335_p1 = scmp.lt.s32.totalorder %s1712_s25, 3  ;;  %p1496_p2 = scmp.eq.s32.totalorder %s1800_s26, 0 }
   0x5   : > { %s1714_s28 = smov [#allocation4]   ;;  %s1715_s30 = smov [#allocation7]  }
   0x6   : > { %p1805_p3 = pnand %p1248_p0, %p335_p1  ;;  %s369_s29 = sshll.u32 %s1714_s28, 4  ;;  %s370_s29 = int_to_ptr.vmem [resolvable:$true] %s369_s29 }
   0x7   : > { %s401_s14 = sshll.u32 %s1715_s30, 4  ;;  %s1716_s16 = smov [#allocation2]   ;;  %s1811_s14 = int_to_ptr.vmem [resolvable:$true] %s401_s14 }
   0x8   : > { %p1480_p4 = pneg %p1805_p3  ;;  %s353_s17 = sshll.u32 %s1716_s16, 4  ;;  %s1819_s17 = int_to_ptr.vmem [resolvable:$true] %s353_s17 }
   0x9   : > { %s1717_s18 = smov [#allocation6]   ;;  %s1575_s21 = scalar_lea.vmem %s370_s29, 1024 }
   0xa   : > { %p1815_p5 = pnand %p1496_p2, %p1480_p4  ;;  %s1821_s19 = sshll.u32 %s1717_s18, 4  ;;  %s386_s19 = int_to_ptr.vmem [resolvable:$true] %s1821_s19 }
   0xb   : > { %p1576_p7 = scmp.ne.s32.totalorder %s370_s29, %s1575_s21  ;;  %p1583_p10 = scmp.lt.s32.totalorder %s370_s29, %s370_s29 }
   0xc   : > { %p1825_p6 = pneg %p1815_p5  ;;  %p1584_p11 = scmp.lt.s32.totalorder %s1575_s21, %s1575_s21 }
   0xe   : > { %p1578_p8 = pnand %p1576_p7, %p1825_p6  ;;  %p1585_p12 = por %p1584_p11, %p1583_p10 }
  0x10   : > { %p1579_p9 = pneg %p1578_p8 }
  0x12   : > { %p1586_p13 = pnand %p1585_p12, %p1579_p9 }
  0x14   : > { %1589 = shalt.err (!%p1586_p13)
}
  0x15   : > { %s1718_s22 = smov 64   ;;  %s1719_s23 = smov 4  }
  0x16   : > { %1486 = dma.hbm_to_vmem [thread:$0]  (!%p1815_p5), %s2010_s5, 1024, %s370_s29, [#allocation5], %s1718_s22, %s1718_s22, %s1719_s23  }
  0x17   : > { %s1601_s30 = scalar_lea.vmem %s1811_s14, 1024  ;;  %p1609_p7 = scmp.lt.s32.totalorder %s1811_s14, %s1811_s14 }
  0x18   : > { %p1602_p0 = scmp.ne.s32.totalorder %s1811_s14, %s1601_s30  ;;  %p1610_p8 = scmp.lt.s32.totalorder %s1601_s30, %s1601_s30 }
  0x1a   : > { %p1604_p1 = pnand %p1602_p0, %p1825_p6  ;;  %p1611_p9 = por %p1610_p8, %p1609_p7 }
  0x1c   : > { %p1605_p4 = pneg %p1604_p1 }
  0x1e   : > { %p1612_p10 = pnand %p1611_p9, %p1605_p4 }
  0x20   : > { %1615 = shalt.err (!%p1612_p10)
}
  0x21   : > { %1492 = dma.hbm_to_vmem [thread:$0]  (!%p1815_p5), %s2014_s9, 1024, %s1811_s14, [#allocation8], %s1718_s22, %s1718_s22, %s1719_s23  }
  0x22   : > { %s1627_s29 = scalar_lea.vmem %s1819_s17, 1024  ;;  %p1635_p0 = scmp.lt.s32.totalorder %s1819_s17, %s1819_s17 }
  0x23   : > { %p1628_p11 = scmp.ne.s32.totalorder %s1819_s17, %s1627_s29  ;;  %p1636_p1 = scmp.lt.s32.totalorder %s1627_s29, %s1627_s29 }
  0x25   : > { %p1630_p12 = pnand %p1628_p11, %p1825_p6  ;;  %p1637_p4 = por %p1636_p1, %p1635_p0 }
  0x27   : > { %p1631_p13 = pneg %p1630_p12 }
  0x29   : > { %p1638_p7 = pnand %p1637_p4, %p1631_p13 }
  0x2b   : > { %1641 = shalt.err (!%p1638_p7)
}
  0x2c   : > { %1483 = dma.hbm_to_vmem [thread:$0]  (!%p1815_p5), %s2008_s3, 1024, %s1819_s17, [#allocation3], %s1718_s22, %s1718_s22, %s1719_s23  }
  0x2d   : > { %s1653_s14 = scalar_lea.vmem %s386_s19, 1024  ;;  %p1661_p11 = scmp.lt.s32.totalorder %s386_s19, %s386_s19 }
  0x2e   : > { %p1654_p8 = scmp.ne.s32.totalorder %s386_s19, %s1653_s14  ;;  %p1662_p12 = scmp.lt.s32.totalorder %s1653_s14, %s1653_s14 }
  0x30   : > { %p1656_p9 = pnand %p1654_p8, %p1825_p6  ;;  %p1663_p13 = por %p1662_p12, %p1661_p11 }
  0x32   : > { %p1657_p10 = pneg %p1656_p9 }
  0x34   : > { %p1664_p0 = pnand %p1663_p13, %p1657_p10 }
  0x36   : > { %1667 = shalt.err (!%p1664_p0)
}
  0x37   : > { %1489 = dma.hbm_to_vmem [thread:$0]  (!%p1815_p5), %s2012_s7, 1024, %s386_s19, [#allocation5], %s1718_s22, %s1718_s22, %s1719_s23  }
  0x38   : > { %s1720_s17 = smov [#allocation9]  }
  0x39   : > { %s417_s16 = sshll.u32 %s1720_s17, 4  ;;  %s418_s16 = int_to_ptr.vmem [resolvable:$true] %s417_s16 }
  0x3a   : > { %s1679_s18 = scalar_lea.vmem %s418_s16, 1024  ;;  %p1687_p8 = scmp.lt.s32.totalorder %s418_s16, %s418_s16 }
  0x3b   : > { %p1680_p1 = scmp.ne.s32.totalorder %s418_s16, %s1679_s18  ;;  %p1688_p9 = scmp.lt.s32.totalorder %s1679_s18, %s1679_s18 }
  0x3d   : > { %p1682_p4 = pnand %p1680_p1, %p1825_p6  ;;  %p1689_p10 = por %p1688_p9, %p1687_p8 }
  0x3f   : > { %p1683_p7 = pneg %p1682_p4 }
  0x41   : > { %p1690_p11 = pnand %p1689_p10, %p1683_p7 }
  0x43   : > { %1693 = shalt.err (!%p1690_p11)
}
  0x44   : > { %1495 = dma.hbm_to_vmem [thread:$0]  (!%p1815_p5), %s2016_s11, 1024, %s418_s16, [#allocation8], %s1718_s22, %s1718_s22, %s1719_s23  }
  0x45   : > { %443 = sbr.rel (%p1805_p3) target bundleno = 1279 (0x4ff), region = 72 }
  0x4a   : > { %1699 = dma.done.wait (%p1496_p2), [#allocation3], 1024  }
  0x4b   : > { %1701 = vsyncadd (%p1496_p2), [#allocation3], 4294966272 }
  0x4c   : > { %1703 = dma.done.wait (%p1496_p2), [#allocation5], 2048  }
  0x4d   : > { %1705 = vsyncadd (%p1496_p2), [#allocation5], 4294965248 }
  0x4e   : > { %1707 = dma.done.wait (%p1496_p2), [#allocation8], 2048  }
  0x4f   : > { %1709 = vsyncadd (%p1496_p2), [#allocation8], 4294965248  ;;  %p501_p3 = scmp.lt.s32.totalorder %s1800_s26, 1  ;;  %v1721_v0 = vmov 0.0   ;;  %vm1722_vm0 = vmmov 0   ;;  %vm516_vm1 = vcmask 1043456   ;;  %v565_v18 = vlaneseq }
  0x50   : > { %1354 = vmatprep.subr.bf16.mxu0 %v1721_v0  ;;  %1356 = vmatprep.mubr.msk.bf16.mxu0 %vm1722_vm0, %v1721_v0  ;;  %v511_v1 = vld [vmem:[%s2006_s1] sm:$0xf]  ;;  %vm512_vm2 = vcmask 64512   ;;  %v1524_v3 = vld [vmem:[#allocation2 + $0x38] sm:$0xff]   ;;  %v1525_v5 = vld [vmem:[#allocation2 + $0x30] sm:$0xff]   ;;  %v1723_v29 = vmov 0  }
  0x51   : > { %s2023_s26 = smov (!%p501_p3, %s1800_s26), 1  ;;  %1360 = vmatprep.subr.bf16.mxu1 %v1721_v0  ;;  %1376 = vmatprep.mubr.msk.bf16.mxu1 %vm1722_vm0, %v1721_v0  ;;  %v518_v2 = vsel %vm516_vm1, %v511_v1, 0  ;;  %v1526_v6 = vld [vmem:[#allocation2 + $0x28] sm:$0xff]   ;;  %v1527_v7 = vld [vmem:[#allocation2 + $0x20] sm:$0xff]   ;;  %v1528_v8 = vld [vmem:[#allocation2 + $0x18] sm:$0xff]   ;;  %v566_v19 = vshrl.u32 %v565_v18, 7 }
  0x52   : > { %s1261_s27 = sshll.u32 %s2023_s26, 2  ;;  %1355 = vmatpush3.bf16.msra.mxu0 %v518_v2  ;;  %1361 = vmatpush3.bf16.msra.mxu1 %v1524_v3  ;;  %v1529_v9 = vld [vmem:[#allocation2 + $0x10] sm:$0xff]   ;;  %v1530_v10 = vld [vmem:[#allocation2 + $0x8] sm:$0xff]   ;;  %v1531_v11 = vld [vmem:[#allocation2] sm:$0xff]   ;;  %s1262_s15 = sshll.u32 %s2023_s26, 3 }
  0x53   : > { %s504_s22 = scalar_lea.vmem %s2005_s0, %s1261_s27  ;;  %1380 = vmatprep.subr.bf16.mxu0 %v1721_v0  ;;  %1362 = vmatprep.subr.bf16.mxu1 %v1721_v0  ;;  %v1532_v12 = vld [vmem:[#allocation4 + $0x38] sm:$0xff]   ;;  %v1533_v13 = vld [vmem:[#allocation4 + $0x30] sm:$0xff]   ;;  %v1534_v14 = vld [vmem:[#allocation4 + $0x28] sm:$0xff]   ;;  %v1941_v22 = vsub.s32 0, %v566_v19  ;;  %s508_s24 = scalar_lea.vmem %s2018_s13, %s1262_s15 }
  0x54   : > { %v510_v4 = vld [vmem:[%s504_s22] sm:$0xf]  ;;  %v1536_v16 = vld [vmem:[#allocation4 + $0x18] sm:$0xff]   ;;  %v1537_v17 = vld [vmem:[#allocation4 + $0x10] sm:$0xff]  }
  0x55   : > { %1357 = vmatmul.mubr.msk.bf16.vlgmr.msra.gmra.mxu0 %vm512_vm2, %v510_v4  ;;  %v1535_v15 = vld [vmem:[#allocation4 + $0x20] sm:$0xff]   ;;  %v1538_v32 = vld [vmem:[#allocation4 + $0x8] sm:$0xff]   ;;  %v1540_v34 = vld [vmem:[#allocation6 + $0x38] sm:$0xff]  }
  0x56   : > { %1396 = vmatprep.mubr.msk.bf16.mxu0 %vm1722_vm0, %v1721_v0  ;;  %1363 = vmatpush3.bf16.msra.mxu1 %v1525_v5  ;;  %v561_v20 = vld [vmem:[%s2007_s2] sm:$0x1]  ;;  %v1541_v35 = vld [vmem:[#allocation6 + $0x30] sm:$0xff]   ;;  %v1542_v36 = vld [vmem:[#allocation6 + $0x28] sm:$0xff]  }
  0x57   : > { %1364 = vmatprep.subr.bf16.mxu1 %v1721_v0  ;;  %1381 = vmatpush3.bf16.msra.mxu0 %v1532_v12  ;;  %v563_v21 = vpack.i.b16 %v561_v20, %v561_v20  ;;  %v1539_v33 = vld [vmem:[#allocation4] sm:$0xff]   ;;  %v1544_v38 = vld [vmem:[#allocation6 + $0x18] sm:$0xff]   ;;  %v1545_v39 = vld [vmem:[#allocation6 + $0x10] sm:$0xff]  }
  0x58   : > { %1382 = vmatprep.subr.bf16.mxu0 %v1721_v0  ;;  %v1543_v37 = vld [vmem:[#allocation6 + $0x20] sm:$0xff]   ;;  %v1546_v50 = vld [vmem:[#allocation6 + $0x8] sm:$0xff]   ;;  %v1548_v52 = vld [vmem:[#allocation7 + $0x38] sm:$0xff]  }
  0x59   : > { %v568_v23 = vrot.slane %v563_v21, %v1941_v22  ;;  %v676_v40 = vld [vmem:[%s2009_s4] sm:$0x1]  ;;  %v1549_v53 = vld [vmem:[#allocation7 + $0x30] sm:$0xff]   ;;  %v1550_v54 = vld [vmem:[#allocation7 + $0x28] sm:$0xff]  }
  0x5a   : > { %1365 = vmatpush3.bf16.msra.mxu1 %v1526_v6  ;;  %v678_v41 = vpack.i.b16 %v676_v40, %v676_v40  ;;  %v1547_v51 = vld [vmem:[#allocation6] sm:$0xff]   ;;  %v1552_v56 = vld [vmem:[#allocation7 + $0x18] sm:$0xff]   ;;  %v1553_v57 = vld [vmem:[#allocation7 + $0x10] sm:$0xff]  }
  0x5b   : > { %1366 = vmatprep.subr.bf16.mxu1 %v1721_v0  ;;  %1383 = vmatpush3.bf16.msra.mxu0 %v1533_v13  ;;  %v1551_v55 = vld [vmem:[#allocation7 + $0x20] sm:$0xff]   ;;  %v1554_v5 = vld [vmem:[#allocation7 + $0x8] sm:$0xff]   ;;  %v1561_v12 = vld [vmem:[#allocation9 + $0x10] sm:$0xff]  }
  0x5c   : > { %1384 = vmatprep.subr.bf16.mxu0 %v1721_v0  ;;  %v683_v42 = vrot.slane %v678_v41, %v1941_v22  ;;  %v791_v58 = vld [vmem:[%s2011_s6] sm:$0x1] }
  0x5d   : > { %v793_v59 = vpack.i.b16 %v791_v58, %v791_v58  ;;  %v1555_v6 = vld [vmem:[#allocation7] sm:$0xff]  }
  0x5e   : > { %1367 = vmatpush3.bf16.msra.mxu1 %v1527_v7  ;;  %v1556_v7 = vld [vmem:[#allocation9 + $0x38] sm:$0xff]   ;;  %v906_v13 = vld [vmem:[%s2013_s8] sm:$0x1] }
  0x5f   : > { %1368 = vmatprep.subr.bf16.mxu1 %v1721_v0  ;;  %1385 = vmatpush3.bf16.msra.mxu0 %v1534_v14  ;;  %v798_v60 = vrot.slane %v793_v59, %v1941_v22  ;;  %v908_v14 = vpack.i.b16 %v906_v13, %v906_v13 }
  0x60   : > { %1386 = vmatprep.subr.bf16.mxu0 %v1721_v0 }
  0x62   : > { %1369 = vmatpush3.bf16.msra.mxu1 %v1528_v8  ;;  %v1557_v8 = vld [vmem:[#allocation9 + $0x30] sm:$0xff]  }
  0x63   : > { %1370 = vmatprep.subr.bf16.mxu1 %v1721_v0  ;;  %1387 = vmatpush3.bf16.msra.mxu0 %v1535_v15  ;;  %v913_v15 = vrot.slane %v908_v14, %v1941_v22 }
  0x64   : > { %1388 = vmatprep.subr.bf16.mxu0 %v1721_v0 }
  0x66   : > { %1371 = vmatpush3.bf16.msra.mxu1 %v1529_v9  ;;  %v1558_v9 = vld [vmem:[#allocation9 + $0x28] sm:$0xff]  }
  0x67   : > { %1372 = vmatprep.subr.bf16.mxu1 %v1721_v0  ;;  %1389 = vmatpush3.bf16.msra.mxu0 %v1536_v16 }
  0x68   : > { %1390 = vmatprep.subr.bf16.mxu0 %v1721_v0 }
  0x6a   : > { %1373 = vmatpush3.bf16.msra.mxu1 %v1530_v10  ;;  %v1559_v10 = vld [vmem:[#allocation9 + $0x20] sm:$0xff]  }
  0x6b   : > { %1374 = vmatprep.subr.bf16.mxu1 %v1721_v0  ;;  %1391 = vmatpush3.bf16.msra.mxu0 %v1537_v17 }
  0x6c   : > { %1392 = vmatprep.subr.bf16.mxu0 %v1721_v0 }
  0x6e   : > { %1375 = vmatpush3.bf16.msra.mxu1 %v1531_v11  ;;  %v1560_v11 = vld [vmem:[#allocation9 + $0x18] sm:$0xff]  }
  0x6f   : > { %1400 = vmatprep.subr.bf16.mxu1 %v1721_v0  ;;  %1393 = vmatpush3.bf16.msra.mxu0 %v1538_v32 }
  0x70   : > { %1394 = vmatprep.subr.bf16.mxu0 %v1721_v0 }
  0x73   : > { %1395 = vmatpush3.bf16.msra.mxu0 %v1539_v33 }
  0x74   : > { %1420 = vmatprep.subr.bf16.mxu0 %v1721_v0 }
 0x115   : > { %v554_v24 = vpop.f32.mrf.mxu0 }
 0x116   : > { %v560_v25 = vpack.c.bf16 %v554_v24, %v554_v24  ;;  %v1562_v24 = vld [vmem:[#allocation9 + $0x8] sm:$0xff]  }
 0x117   : > { %v1358_v26 = vpop.f32.mrf.mxu0 }
 0x118   : > { %v569_v27 = vadd.bf16 %v568_v23, %v560_v25  ;;  %v1563_v25 = vld [vmem:[#allocation9] sm:$0xff]  }
 0x119   : > { %v557_v28 = vpop.f32.mrf.mxu0  ;;  %v1021_v26 = vld [vmem:[%s2015_s10] sm:$0x1] }
 0x11a   : > { %v570_v30 = vmax.bf16 %v1723_v29, %v569_v27  ;;  %v1023_v27 = vpack.i.b16 %v1021_v26, %v1021_v26 }
 0x11b   : > { %v1359_v31 = vpop.f32.mrf.mxu0 }
 0x11c   : > { %1377 = vmatmul.mubr.bf16.vlgmr.msra.gmra.mxu1 %v570_v30  ;;  %v1028_v28 = vrot.slane %v1023_v27, %v1941_v22 }
 0x11d   : > { %1416 = vmatprep.mubr.msk.bf16.mxu1 %vm1722_vm0, %v1721_v0  ;;  %1401 = vmatpush3.bf16.msra.mxu1 %v1540_v34 }
 0x11e   : > { %1402 = vmatprep.subr.bf16.mxu1 %v1721_v0 }
 0x121   : > { %1403 = vmatpush3.bf16.msra.mxu1 %v1541_v35 }
 0x122   : > { %1404 = vmatprep.subr.bf16.mxu1 %v1721_v0 }
 0x125   : > { %1405 = vmatpush3.bf16.msra.mxu1 %v1542_v36 }
 0x126   : > { %1406 = vmatprep.subr.bf16.mxu1 %v1721_v0 }
 0x129   : > { %1407 = vmatpush3.bf16.msra.mxu1 %v1543_v37 }
 0x12a   : > { %1408 = vmatprep.subr.bf16.mxu1 %v1721_v0 }
 0x12d   : > { %1409 = vmatpush3.bf16.msra.mxu1 %v1544_v38 }
 0x12e   : > { %1410 = vmatprep.subr.bf16.mxu1 %v1721_v0 }
 0x131   : > { %1411 = vmatpush3.bf16.msra.mxu1 %v1545_v39 }
 0x132   : > { %1412 = vmatprep.subr.bf16.mxu1 %v1721_v0 }
 0x135   : > { %1413 = vmatpush3.bf16.msra.mxu1 %v1546_v50 }
 0x136   : > { %1414 = vmatprep.subr.bf16.mxu1 %v1721_v0 }
 0x139   : > { %1415 = vmatpush3.bf16.msra.mxu1 %v1547_v51 }
 0x13a   : > { %1440 = vmatprep.subr.bf16.mxu1 %v1721_v0 }
 0x1dc   : > { %v669_v43 = vpop.f32.mrf.mxu1 }
 0x1dd   : > { %v675_v44 = vpack.c.bf16 %v669_v43, %v669_v43 }
 0x1de   : > { %v1378_v45 = vpop.f32.mrf.mxu1 }
 0x1df   : > { %v684_v46 = vadd.bf16 %v683_v42, %v675_v44 }
 0x1e0   : > { %v672_v47 = vpop.f32.mrf.mxu1 }
 0x1e1   : > { %v685_v48 = vmax.bf16 %v1723_v29, %v684_v46 }
 0x1e2   : > { %v1379_v49 = vpop.f32.mrf.mxu1 }
 0x1e3   : > { %1397 = vmatmul.mubr.bf16.vlgmr.msra.gmra.mxu0 %v685_v48 }
 0x1e4   : > { %1436 = vmatprep.mubr.msk.bf16.mxu0 %vm1722_vm0, %v1721_v0  ;;  %1421 = vmatpush3.bf16.msra.mxu0 %v1548_v52 }
 0x1e5   : > { %1422 = vmatprep.subr.bf16.mxu0 %v1721_v0 }
 0x1e8   : > { %1423 = vmatpush3.bf16.msra.mxu0 %v1549_v53 }
 0x1e9   : > { %1424 = vmatprep.subr.bf16.mxu0 %v1721_v0 }
 0x1ec   : > { %1425 = vmatpush3.bf16.msra.mxu0 %v1550_v54 }
 0x1ed   : > { %1426 = vmatprep.subr.bf16.mxu0 %v1721_v0 }
 0x1f0   : > { %1427 = vmatpush3.bf16.msra.mxu0 %v1551_v55 }
 0x1f1   : > { %1428 = vmatprep.subr.bf16.mxu0 %v1721_v0 }
 0x1f4   : > { %1429 = vmatpush3.bf16.msra.mxu0 %v1552_v56 }
 0x1f5   : > { %1430 = vmatprep.subr.bf16.mxu0 %v1721_v0 }
 0x1f8   : > { %1431 = vmatpush3.bf16.msra.mxu0 %v1553_v57 }
 0x1f9   : > { %1432 = vmatprep.subr.bf16.mxu0 %v1721_v0 }
 0x1fc   : > { %1433 = vmatpush3.bf16.msra.mxu0 %v1554_v5 }
 0x1fd   : > { %1434 = vmatprep.subr.bf16.mxu0 %v1721_v0 }
 0x200   : > { %1435 = vmatpush3.bf16.msra.mxu0 %v1555_v6 }
 0x2a3   : > { %v784_v61 = vpop.f32.mrf.mxu0 }
 0x2a4   : > { %v790_v62 = vpack.c.bf16 %v784_v61, %v784_v61 }
 0x2a5   : > { %v1398_v63 = vpop.f32.mrf.mxu0 }
 0x2a6   : > { %v799_v1 = vadd.bf16 %v798_v60, %v790_v62 }
 0x2a7   : > { %v787_v2 = vpop.f32.mrf.mxu0 }
 0x2a8   : > { %v800_v3 = vmax.bf16 %v1723_v29, %v799_v1 }
 0x2a9   : > { %v1399_v4 = vpop.f32.mrf.mxu0 }
 0x2aa   : > { %1417 = vmatmul.mubr.bf16.vlgmr.msra.gmra.mxu1 %v800_v3 }
 0x2ab   : > { %1456 = vmatprep.mubr.msk.bf16.mxu1 %vm1722_vm0, %v1721_v0  ;;  %1441 = vmatpush3.bf16.msra.mxu1 %v1556_v7 }
 0x2ac   : > { %1442 = vmatprep.subr.bf16.mxu1 %v1721_v0 }
 0x2af   : > { %1443 = vmatpush3.bf16.msra.mxu1 %v1557_v8 }
 0x2b0   : > { %1444 = vmatprep.subr.bf16.mxu1 %v1721_v0 }
 0x2b3   : > { %1445 = vmatpush3.bf16.msra.mxu1 %v1558_v9 }
 0x2b4   : > { %1446 = vmatprep.subr.bf16.mxu1 %v1721_v0 }
 0x2b7   : > { %1447 = vmatpush3.bf16.msra.mxu1 %v1559_v10 }
 0x2b8   : > { %1448 = vmatprep.subr.bf16.mxu1 %v1721_v0 }
 0x2bb   : > { %1449 = vmatpush3.bf16.msra.mxu1 %v1560_v11 }
 0x2bc   : > { %1450 = vmatprep.subr.bf16.mxu1 %v1721_v0 }
 0x2bf   : > { %1451 = vmatpush3.bf16.msra.mxu1 %v1561_v12 }
 0x2c0   : > { %1452 = vmatprep.subr.bf16.mxu1 %v1721_v0 }
 0x2c3   : > { %1453 = vmatpush3.bf16.msra.mxu1 %v1562_v24 }
 0x2c4   : > { %1454 = vmatprep.subr.bf16.mxu1 %v1721_v0  ;;  %v1296_v0 = vld [vmem:[%s2017_s12] ss:$0 sm:$0xff] }
 0x2c7   : > { %1455 = vmatpush3.bf16.msra.mxu1 %v1563_v25 }
 0x36a   : > { %v899_v16 = vpop.f32.mrf.mxu1 }
 0x36b   : > { %v905_v17 = vpack.c.bf16 %v899_v16, %v899_v16 }
 0x36c   : > { %v1418_v18 = vpop.f32.mrf.mxu1 }
 0x36d   : > { %v914_v19 = vadd.bf16 %v913_v15, %v905_v17 }
 0x36e   : > { %v902_v20 = vpop.f32.mrf.mxu1 }
 0x36f   : > { %v915_v21 = vmax.bf16 %v1723_v29, %v914_v19 }
 0x370   : > { %v1419_v23 = vpop.f32.mrf.mxu1 }
 0x371   : > { %1437 = vmatmul.mubr.bf16.vlgmr.msra.gmra.mxu0 %v915_v21 }
 0x431   : > { %v1014_v30 = vpop.f32.mrf.mxu0 }
 0x432   : > { %v1020_v31 = vpack.c.bf16 %v1014_v30, %v1014_v30 }
 0x433   : > { %v1438_v32 = vpop.f32.mrf.mxu0 }
 0x434   : > { %v1029_v33 = vadd.bf16 %v1028_v28, %v1020_v31 }
 0x435   : > { %v1017_v34 = vpop.f32.mrf.mxu0 }
 0x436   : > { %v1030_v35 = vmax.bf16 %v1723_v29, %v1029_v33 }
 0x437   : > { %v1439_v36 = vpop.f32.mrf.mxu0 }
 0x438   : > { %1457 = vmatmul.mubr.bf16.vlgmr.msra.gmra.mxu1 %v1030_v35 }
 0x4f8   : > { %v1136_v37 = vpop.f32.mrf.mxu1 }
 0x4f9   : > { %v1137_v22 = vadd.f32 %v1296_v0, %v1136_v37 }
 0x4fa   : > { %v1458_v38 = vpop.f32.mrf.mxu1 }
 0x4fb   : > { %1142 = vst [vmem:[%s508_s24] sm:$0xff] %v1137_v22 }
 0x4fc   : > { %v1139_v39 = vpop.f32.mrf.mxu1 }
 0x4fe   : > { %v1459_v40 = vpop.f32.mrf.mxu1 }
 0x4ff PF: > { %s26_s25 = sadd.s32 1, %s1712_s25  }
 0x500   : > { %p23_p2 = scmp.ge.s32.totalorder %s26_s25, 4  }
 0x502   :  { %25 = sbr.rel (!%p23_p2) target bundleno = 3 (0x3), region = 123 }
 0x507   :  { %1162 = vsyncpa [#allocation3], 1 }
 0x508   :  { %1164 = vsyncpa [#allocation3 + $0x1], 1 }
 0x509   :  { %1165 = vsyncpa [#allocation5], 1 }
 0x50a   :  { %1166 = vsyncpa [#allocation8], 1 }

</bundles_post_ra>
